<compile_context>
chip_gen: v5e
topology: v5e:2x2
jax: 0.10.0
libtpu: 0.0.40
codegen_flags: <defaults>
</compile_context>

<pallas_src>
import jax
import jax.numpy as jnp
from jax.experimental import pallas as pl
from jax.experimental.pallas import tpu as pltpu

LANE = 128
SUBLANE = 8


def _round_up(n, m):
    return (n + m - 1) // m * m


def gru_kernel(x_ref, h_ref, wzr_ref, wh_ref, uzr_ref, uh_ref,
               bzr_ref, bwh_ref, buh_ref, out_ref):
    """One fused GRU step on a (tb, Hp) batch tile.

    x_ref   : (tb, Kp)      input tile (K padded to 128 lanes), compute dtype
    h_ref   : (tb, Hp)      previous hidden tile, compute dtype
    wzr_ref : (Kp, 2*Hp)    [Wz | Wr]  (pre-transposed, per-gate padded)
    wh_ref  : (Kp, Hp)      Wh
    uzr_ref : (Hp, 2*Hp)    [Uz | Ur]
    uh_ref  : (Hp, Hp)      Uh
    bzr_ref : (1, 2*Hp)     [bWz+bUz | bWr+bUr]   (f32)
    bwh_ref : (1, Hp)       bWh                    (f32)
    buh_ref : (1, Hp)       bUh (kept separate: scaled by r)
    """
    Hp = out_ref.shape[-1]
    x = x_ref[...]
    h = h_ref[...]
    h_f32 = h.astype(jnp.float32)

    # z/r pre-activation: two MXU pushes accumulated into ONE f32 result.
    zr = jax.nn.sigmoid(
        jnp.dot(x, wzr_ref[...], preferred_element_type=jnp.float32)
        + jnp.dot(h, uzr_ref[...], preferred_element_type=jnp.float32)
        + bzr_ref[...])
    z = zr[:, :Hp]
    r = zr[:, Hp:]

    # Candidate gate: xg_h and hg_h kept separate (hg_h is scaled by r).
    xg_h = jnp.dot(x, wh_ref[...], preferred_element_type=jnp.float32) + bwh_ref[...]
    hg_h = jnp.dot(h, uh_ref[...], preferred_element_type=jnp.float32) + buh_ref[...]
    h_tilde = jnp.tanh(xg_h + r * hg_h)

    # h_next = (1 - z) * h + z * h_tilde  ==  h + z * (h_tilde - h)
    out_ref[...] = (h_f32 + z * (h_tilde - h_f32)).astype(out_ref.dtype)


def prepare_gru_params(params, dtype=jnp.bfloat16):
    """One-time parameter prep (do NOT call per step).

    Transposes PyTorch-layout (out, in) weights to (in, out), concatenates the
    z/r gates, pads the hidden dim to a multiple of 128 lanes and the input
    dim to a multiple of 128 (full MXU K-tiles), and folds the z/r biases.
    Default dtype is bf16 (native MXU rate); accumulation in-kernel is f32.
    Returned dict contains ONLY arrays (jit-friendly).
    """
    hidden, in_size = params["Wz"][0].shape
    Hp = _round_up(hidden, LANE)
    Kp = _round_up(in_size, LANE)

    def gate_w(name, rows_padded):
        w_t = params[name][0].T.astype(dtype)             # (rows, hidden)
        return jnp.pad(w_t, ((0, rows_padded - w_t.shape[0]), (0, Hp - hidden)))

    def gate_b(name):
        return jnp.pad(params[name][1].astype(jnp.float32), (0, Hp - hidden))

    w_zr = jnp.concatenate([gate_w("Wz", Kp), gate_w("Wr", Kp)], axis=1)   # (Kp, 2*Hp)
    w_h = gate_w("Wh", Kp)                                                 # (Kp, Hp)
    u_zr = jnp.concatenate([gate_w("Uz", Hp), gate_w("Ur", Hp)], axis=1)   # (Hp, 2*Hp)
    u_h = gate_w("Uh", Hp)                                                 # (Hp, Hp)

    b_zr = jnp.concatenate([gate_b("Wz") + gate_b("Uz"),
                            gate_b("Wr") + gate_b("Ur")]).reshape(1, 2 * Hp)
    b_wh = gate_b("Wh").reshape(1, Hp)
    b_uh = gate_b("Uh").reshape(1, Hp)

    return {"w_zr": w_zr, "w_h": w_h, "u_zr": u_zr, "u_h": u_h,
            "b_zr": b_zr, "b_wh": b_wh, "b_uh": b_uh}


def gru_forward(x, h_prev, prepared, *, batch_tile=256):
    """Single GRU step: h_next = (1 - z) * h_prev + z * h_tilde."""
    B, in_size = x.shape
    H = h_prev.shape[1]
    w_zr, w_h = prepared["w_zr"], prepared["w_h"]
    u_zr, u_h = prepared["u_zr"], prepared["u_h"]
    b_zr, b_wh, b_uh = prepared["b_zr"], prepared["b_wh"], prepared["b_uh"]
    Kp, Hp = w_h.shape
    cdtype = w_h.dtype

    # Balanced, sublane-aligned batch tiling; force >= 2 tiles when the batch
    # is big enough so the "parallel" axis shards across v7x's 2 TensorCores.
    n_tiles = pl.cdiv(B, batch_tile)
    if n_tiles == 1 and B >= 2 * SUBLANE:
        n_tiles = 2
    tb = _round_up(pl.cdiv(B, n_tiles), SUBLANE)
    Bp = n_tiles * tb

    xp = jnp.pad(x, ((0, Bp - B), (0, Kp - in_size))).astype(cdtype)
    hp = jnp.pad(h_prev, ((0, Bp - B), (0, Hp - H))).astype(cdtype)

    def nbytes(a):
        return a.size * a.dtype.itemsize

    # Resident footprint: batch tiles double-buffered, weights single-buffered
    # (pl.Buffered(1)), plus live f32 intermediates, plus headroom.
    act_itemsize = jnp.dtype(cdtype).itemsize
    weight_bytes = (nbytes(w_zr) + nbytes(w_h) + nbytes(u_zr) + nbytes(u_h)
                    + nbytes(b_zr) + nbytes(b_wh) + nbytes(b_uh))
    tile_bytes = tb * (Kp + 2 * Hp) * act_itemsize       # x + h + out tiles
    f32_live = 6 * tb * Hp * 4                           # zr / xg_h / hg_h / h_tilde ...
    footprint = 2 * tile_bytes + weight_bytes + f32_live

    # Generation-aware VMEM cap (v7x: 64 MiB physical, v5e/v6e: 128 MiB).
    try:
        phys_vmem = int(pltpu.get_tpu_info().vmem_capacity_bytes)
    except Exception:
        phys_vmem = 64 << 20
    cap = max(int(phys_vmem * 0.85), 32 << 20)
    vmem_limit = int(min(max(footprint + (4 << 20), 16 << 20), cap))

    resident = pl.Buffered(1)   # constant index_map -> never re-fetched

    out = pl.pallas_call(
        gru_kernel,
        out_shape=jax.ShapeDtypeStruct((Bp, Hp), cdtype),
        grid_spec=pltpu.PrefetchScalarGridSpec(
            num_scalar_prefetch=0,
            grid=(n_tiles,),
            in_specs=[
                pl.BlockSpec((tb, Kp), lambda b: (b, 0)),                     # x tile
                pl.BlockSpec((tb, Hp), lambda b: (b, 0)),                     # h tile
                pl.BlockSpec((Kp, 2 * Hp), lambda b: (0, 0), pipeline_mode=resident),  # [Wz|Wr]
                pl.BlockSpec((Kp, Hp), lambda b: (0, 0), pipeline_mode=resident),      # Wh
                pl.BlockSpec((Hp, 2 * Hp), lambda b: (0, 0), pipeline_mode=resident),  # [Uz|Ur]
                pl.BlockSpec((Hp, Hp), lambda b: (0, 0), pipeline_mode=resident),      # Uh
                pl.BlockSpec((1, 2 * Hp), lambda b: (0, 0), pipeline_mode=resident),   # b_zr
                pl.BlockSpec((1, Hp), lambda b: (0, 0), pipeline_mode=resident),       # b_wh
                pl.BlockSpec((1, Hp), lambda b: (0, 0), pipeline_mode=resident),       # b_uh
            ],
            out_specs=pl.BlockSpec((tb, Hp), lambda b: (b, 0)),
        ),
        compiler_params=pltpu.CompilerParams(
            dimension_semantics=("parallel",),
            vmem_limit_bytes=vmem_limit,
        ),
        input_output_aliases={1: 0},   # reuse the padded h buffer for h_next
    )(xp, hp, w_zr, w_h, u_zr, u_h, b_zr, b_wh, b_uh)

    return out[:B, :H].astype(h_prev.dtype)


def init_linear(key, in_features, out_features):
    """Deterministic init matching nn.Linear's U(-1/sqrt(in), 1/sqrt(in))."""
    kw, kb = jax.random.split(key)
    bound = 1.0 / jnp.sqrt(jnp.float32(in_features))
    w = jax.random.uniform(kw, (out_features, in_features), jnp.float32, -bound, bound)
    b = jax.random.uniform(kb, (out_features,), jnp.float32, -bound, bound)
    return w, b


def gru_reference(x, h_prev, params):
    def lin(name, v):
        w, b = params[name]
        return v @ w.T + b

    z = jax.nn.sigmoid(lin("Wz", x) + lin("Uz", h_prev))
    r = jax.nn.sigmoid(lin("Wr", x) + lin("Ur", h_prev))
    h_tilde = jnp.tanh(lin("Wh", x) + r * lin("Uh", h_prev))
    return (1.0 - z) * h_prev + z * h_tilde


if __name__ == "__main__":
    input_size = 16
    hidden_size = 32
    batch = 8

    key = jax.random.PRNGKey(0)
    keys = jax.random.split(key, 8)

    params = {
        "Wz": init_linear(keys[0], input_size, hidden_size),
        "Wr": init_linear(keys[1], input_size, hidden_size),
        "Wh": init_linear(keys[2], input_size, hidden_size),
        "Uz": init_linear(keys[3], hidden_size, hidden_size),
        "Ur": init_linear(keys[4], hidden_size, hidden_size),
        "Uh": init_linear(keys[5], hidden_size, hidden_size),
    }

    x = jax.random.normal(keys[6], (batch, input_size), jnp.float32)
    h_prev = jax.random.normal(keys[7], (batch, hidden_size), jnp.float32)

    ref = gru_reference(x, h_prev, params)
    gru_step = jax.jit(gru_forward)

    # f32 weight path: exact-semantics check against the reference.
    prep_f32 = prepare_gru_params(params, dtype=jnp.float32)
    h_f32 = jax.block_until_ready(gru_step(x, h_prev, prep_f32))
    assert h_f32.shape == (batch, hidden_size)
    assert jnp.allclose(h_f32, ref, atol=1e-5, rtol=1e-5)

    # bf16 weight/activation path (default perf path, f32 accumulation).
    prep_bf16 = prepare_gru_params(params)
    h_bf16 = jax.block_until_ready(gru_step(x, h_prev, prep_bf16))
    assert h_bf16.shape == (batch, hidden_size)
    assert jnp.allclose(h_bf16, ref, atol=5e-2, rtol=5e-2)

    print("KERNEL_OK")
</pallas_src>

<mosaic_0001>
module attributes {stable_mosaic.version = 11 : i64} {
  func.func @gru_kernel(%arg0: i32, %arg1: memref<8x128xf32, #tpu.memory_space<vmem>>, %arg2: memref<8x128xf32, #tpu.memory_space<vmem>>, %arg3: memref<128x256xf32, #tpu.memory_space<vmem>>, %arg4: memref<128x128xf32, #tpu.memory_space<vmem>>, %arg5: memref<128x256xf32, #tpu.memory_space<vmem>>, %arg6: memref<128x128xf32, #tpu.memory_space<vmem>>, %arg7: memref<1x256xf32, #tpu.memory_space<vmem>>, %arg8: memref<1x128xf32, #tpu.memory_space<vmem>>, %arg9: memref<1x128xf32, #tpu.memory_space<vmem>>, %arg10: memref<8x128xf32, #tpu.memory_space<vmem>>) attributes {dimension_semantics = [#tpu.dimension_semantics<parallel>], iteration_bounds = array<i64: 1>, scalar_prefetch = 0 : i64, scratch_operands = 0 : i64, tpu.core_type = #tpu.core_type<tc>, window_params = [{transform_indices = @transform_0, window_bounds = array<i64: 8, 128>}, {transform_indices = @transform_1, window_bounds = array<i64: 8, 128>}, {pipeline_mode = #tpu.pipeline_mode<synchronous>, transform_indices = @transform_2, window_bounds = array<i64: 128, 256>}, {pipeline_mode = #tpu.pipeline_mode<synchronous>, transform_indices = @transform_3, window_bounds = array<i64: 128, 128>}, {pipeline_mode = #tpu.pipeline_mode<synchronous>, transform_indices = @transform_4, window_bounds = array<i64: 128, 256>}, {pipeline_mode = #tpu.pipeline_mode<synchronous>, transform_indices = @transform_5, window_bounds = array<i64: 128, 128>}, {pipeline_mode = #tpu.pipeline_mode<synchronous>, transform_indices = @transform_6, window_bounds = array<i64: 1, 256>}, {pipeline_mode = #tpu.pipeline_mode<synchronous>, transform_indices = @transform_7, window_bounds = array<i64: 1, 128>}, {pipeline_mode = #tpu.pipeline_mode<synchronous>, transform_indices = @transform_8, window_bounds = array<i64: 1, 128>}, {transform_indices = @transform_9, window_bounds = array<i64: 8, 128>}]} {
    %c0 = arith.constant 0 : index
    %c0_0 = arith.constant 0 : index
    %0 = vector.load %arg1[%c0, %c0_0] : memref<8x128xf32, #tpu.memory_space<vmem>>, vector<8x128xf32>
    %c0_1 = arith.constant 0 : index
    %c0_2 = arith.constant 0 : index
    %1 = vector.load %arg2[%c0_1, %c0_2] : memref<8x128xf32, #tpu.memory_space<vmem>>, vector<8x128xf32>
    %c0_3 = arith.constant 0 : index
    %c0_4 = arith.constant 0 : index
    %2 = vector.load %arg3[%c0_3, %c0_4] : memref<128x256xf32, #tpu.memory_space<vmem>>, vector<128x256xf32>
    %cst = arith.constant dense<0.000000e+00> : vector<8x256xf32>
    %3 = tpu.matmul %0, %2, %cst {dimension_numbers = #tpu.dot_dimension_numbers<[1], [0], [0], [1], [0, 0, 1, 1], [], []>} : vector<8x128xf32>, vector<128x256xf32>, vector<8x256xf32> -> vector<8x256xf32>
    %c0_5 = arith.constant 0 : index
    %c0_6 = arith.constant 0 : index
    %4 = vector.load %arg5[%c0_5, %c0_6] : memref<128x256xf32, #tpu.memory_space<vmem>>, vector<128x256xf32>
    %cst_7 = arith.constant dense<0.000000e+00> : vector<8x256xf32>
    %5 = tpu.matmul %1, %4, %cst_7 {dimension_numbers = #tpu.dot_dimension_numbers<[1], [0], [0], [1], [0, 0, 1, 1], [], []>} : vector<8x128xf32>, vector<128x256xf32>, vector<8x256xf32> -> vector<8x256xf32>
    %6 = arith.addf %3, %5 : vector<8x256xf32>
    %c0_8 = arith.constant 0 : index
    %c0_9 = arith.constant 0 : index
    %7 = vector.load %arg7[%c0_8, %c0_9] : memref<1x256xf32, #tpu.memory_space<vmem>>, vector<1x256xf32>
    %8 = vector.broadcast %7 : vector<1x256xf32> to vector<8x256xf32>
    %9 = arith.addf %6, %8 : vector<8x256xf32>
    %10 = arith.negf %9 : vector<8x256xf32>
    %11 = math.exp %10 : vector<8x256xf32>
    %cst_10 = arith.constant 1.000000e+00 : f32
    %12 = vector.broadcast %cst_10 : f32 to vector<8x256xf32>
    %13 = arith.addf %12, %11 : vector<8x256xf32>
    %14 = arith.divf %12, %13 : vector<8x256xf32>
    %15 = vector.extract_strided_slice %14 {offsets = [0, 0], sizes = [8, 128], strides = [1, 1]} : vector<8x256xf32> to vector<8x128xf32>
    %16 = vector.extract_strided_slice %14 {offsets = [0, 128], sizes = [8, 128], strides = [1, 1]} : vector<8x256xf32> to vector<8x128xf32>
    %c0_11 = arith.constant 0 : index
    %c0_12 = arith.constant 0 : index
    %17 = vector.load %arg4[%c0_11, %c0_12] : memref<128x128xf32, #tpu.memory_space<vmem>>, vector<128x128xf32>
    %cst_13 = arith.constant dense<0.000000e+00> : vector<8x128xf32>
    %18 = tpu.matmul %0, %17, %cst_13 {dimension_numbers = #tpu.dot_dimension_numbers<[1], [0], [0], [1], [0, 0, 1, 1], [], []>} : vector<8x128xf32>, vector<128x128xf32>, vector<8x128xf32> -> vector<8x128xf32>
    %c0_14 = arith.constant 0 : index
    %c0_15 = arith.constant 0 : index
    %19 = vector.load %arg8[%c0_14, %c0_15] : memref<1x128xf32, #tpu.memory_space<vmem>>, vector<1x128xf32>
    %20 = vector.broadcast %19 : vector<1x128xf32> to vector<8x128xf32>
    %21 = arith.addf %18, %20 : vector<8x128xf32>
    %c0_16 = arith.constant 0 : index
    %c0_17 = arith.constant 0 : index
    %22 = vector.load %arg6[%c0_16, %c0_17] : memref<128x128xf32, #tpu.memory_space<vmem>>, vector<128x128xf32>
    %cst_18 = arith.constant dense<0.000000e+00> : vector<8x128xf32>
    %23 = tpu.matmul %1, %22, %cst_18 {dimension_numbers = #tpu.dot_dimension_numbers<[1], [0], [0], [1], [0, 0, 1, 1], [], []>} : vector<8x128xf32>, vector<128x128xf32>, vector<8x128xf32> -> vector<8x128xf32>
    %c0_19 = arith.constant 0 : index
    %c0_20 = arith.constant 0 : index
    %24 = vector.load %arg9[%c0_19, %c0_20] : memref<1x128xf32, #tpu.memory_space<vmem>>, vector<1x128xf32>
    %25 = vector.broadcast %24 : vector<1x128xf32> to vector<8x128xf32>
    %26 = arith.addf %23, %25 : vector<8x128xf32>
    %27 = arith.mulf %16, %26 : vector<8x128xf32>
    %28 = arith.addf %21, %27 : vector<8x128xf32>
    %29 = math.tanh %28 : vector<8x128xf32>
    %30 = arith.subf %29, %1 : vector<8x128xf32>
    %31 = arith.mulf %15, %30 : vector<8x128xf32>
    %32 = arith.addf %1, %31 : vector<8x128xf32>
    %c0_21 = arith.constant 0 : index
    %c0_22 = arith.constant 0 : index
    %33 = vector.load %arg10[%c0_21, %c0_22] : memref<8x128xf32, #tpu.memory_space<vmem>>, vector<8x128xf32>
    tpu.vector_store %arg10[%c0_21, %c0_22], %32 {strides = array<i32>} : memref<8x128xf32, #tpu.memory_space<vmem>>, vector<8x128xf32>,
    return
  }
  func.func @transform_0(%arg0: i32) -> (i32, i32) {
    %c0_i32 = arith.constant 0 : i32
    %c0_i32_0 = arith.constant 0 : i32
    return %arg0, %c0_i32 : i32, i32
  }
  func.func @transform_1(%arg0: i32) -> (i32, i32) {
    %c0_i32 = arith.constant 0 : i32
    %c0_i32_0 = arith.constant 0 : i32
    return %arg0, %c0_i32 : i32, i32
  }
  func.func @transform_2(%arg0: i32) -> (i32, i32) {
    %c0_i32 = arith.constant 0 : i32
    %c0_i32_0 = arith.constant 0 : i32
    %c0_i32_1 = arith.constant 0 : i32
    return %c0_i32, %c0_i32_0 : i32, i32
  }
  func.func @transform_3(%arg0: i32) -> (i32, i32) {
    %c0_i32 = arith.constant 0 : i32
    %c0_i32_0 = arith.constant 0 : i32
    %c0_i32_1 = arith.constant 0 : i32
    return %c0_i32, %c0_i32_0 : i32, i32
  }
  func.func @transform_4(%arg0: i32) -> (i32, i32) {
    %c0_i32 = arith.constant 0 : i32
    %c0_i32_0 = arith.constant 0 : i32
    %c0_i32_1 = arith.constant 0 : i32
    return %c0_i32, %c0_i32_0 : i32, i32
  }
  func.func @transform_5(%arg0: i32) -> (i32, i32) {
    %c0_i32 = arith.constant 0 : i32
    %c0_i32_0 = arith.constant 0 : i32
    %c0_i32_1 = arith.constant 0 : i32
    return %c0_i32, %c0_i32_0 : i32, i32
  }
  func.func @transform_6(%arg0: i32) -> (i32, i32) {
    %c0_i32 = arith.constant 0 : i32
    %c0_i32_0 = arith.constant 0 : i32
    %c0_i32_1 = arith.constant 0 : i32
    return %c0_i32, %c0_i32_0 : i32, i32
  }
  func.func @transform_7(%arg0: i32) -> (i32, i32) {
    %c0_i32 = arith.constant 0 : i32
    %c0_i32_0 = arith.constant 0 : i32
    %c0_i32_1 = arith.constant 0 : i32
    return %c0_i32, %c0_i32_0 : i32, i32
  }
  func.func @transform_8(%arg0: i32) -> (i32, i32) {
    %c0_i32 = arith.constant 0 : i32
    %c0_i32_0 = arith.constant 0 : i32
    %c0_i32_1 = arith.constant 0 : i32
    return %c0_i32, %c0_i32_0 : i32, i32
  }
  func.func @transform_9(%arg0: i32) -> (i32, i32) {
    %c0_i32 = arith.constant 0 : i32
    %c0_i32_0 = arith.constant 0 : i32
    return %arg0, %c0_i32 : i32, i32
  }
}

</mosaic_0001>

<bundles_post_ra>
// kernel: gru_forward.1
= control target key start
LH: loop header
LB: loop body
LE: loop exit
PB: predicated region body
PF: predicated region fallthrough
CT: control target
= control target key end

     0   :  { %14 = vsyncpa [#allocation3], 0  ;;  %s605_s0 = inlined_call_operand.vmem [shape: f32[8,128], index: 0, kind: input, shape index: {}]   ;;  %s606_s1 = inlined_call_operand.vmem [shape: f32[8,128], index: 1, kind: input, shape index: {}, may-alias: {1,9}]   ;;  %s607_s2 = inlined_call_operand.hbm [shape: f32[128,256], index: 2, kind: input, shape index: {}]   ;;  %s608_s3 = inlined_call_operand.hbm [shape: f32[128,128], index: 3, kind: input, shape index: {}]   ;;  %s609_s4 = inlined_call_operand.hbm [shape: f32[128,256], index: 4, kind: input, shape index: {}]   ;;  %s610_s5 = inlined_call_operand.hbm [shape: f32[128,128], index: 5, kind: input, shape index: {}]   ;;  %s611_s6 = inlined_call_operand.vmem [shape: f32[1,256], index: 6, kind: input, shape index: {}]   ;;  %s612_s7 = inlined_call_operand.vmem [shape: f32[1,128], index: 7, kind: input, shape index: {}]   ;;  %s613_s8 = inlined_call_operand.vmem [shape: f32[1,128], index: 8, kind: input, shape index: {}]   ;;  %s614_s9 = inlined_call_operand.vmem [shape: f32[8,128], index: 9, kind: output, shape index: {}, may-alias: {1,9}]  }
   0x1   :  { %15 = vsyncpa [#allocation5], 0  ;;  %s38_s11 = sshll.u32 %s608_s3, 4  ;;  %s39_s11 = int_to_ptr.hbm [resolvable:$true] %s38_s11 }
   0x2   :  { %16 = vsyncpa [#allocation8], 0  ;;  %s505_s12 = smov [#allocation4]   ;;  %s25_s16 = sshll.u32 %s607_s2, 4  ;;  %s26_s16 = int_to_ptr.hbm [resolvable:$true] %s25_s16 }
   0x3   :  { %s40_s13 = sshll.u32 %s505_s12, 4  ;;  %s506_s17 = smov 128   ;;  %s41_s13 = int_to_ptr.vmem [resolvable:$true] %s40_s13 }
   0x4   :  { %s507_s18 = smov 8   ;;  %s508_s19 = smov [#allocation2]  }
   0x5   :  { %46 = dma.hbm_to_vmem [thread:$0]  %s39_s11, 2048, %s41_s13, [#allocation5], %s506_s17, %s506_s17, %s507_s18  }
   0x6   :  { %s27_s20 = sshll.u32 %s508_s19, 4  ;;  %s509_s21 = smov 256   ;;  %s28_s20 = int_to_ptr.vmem [resolvable:$true] %s27_s20 }
   0x7   :  { %s510_s22 = smov 16   ;;  %s51_s24 = sshll.u32 %s609_s4, 4  ;;  %s52_s24 = int_to_ptr.hbm [resolvable:$true] %s51_s24 }
   0x8   :  { %33 = dma.hbm_to_vmem [thread:$0]  %s26_s16, 4096, %s28_s20, [#allocation3], %s509_s21, %s509_s21, %s510_s22  }
   0x9   :  { %s511_s25 = smov [#allocation6]   ;;  %s64_s28 = sshll.u32 %s610_s5, 4  ;;  %s65_s28 = int_to_ptr.hbm [resolvable:$true] %s64_s28 }
   0xa   :  { %s53_s26 = sshll.u32 %s511_s25, 4  ;;  %s512_s29 = smov [#allocation7]   ;;  %s54_s26 = int_to_ptr.vmem [resolvable:$true] %s53_s26 }
   0xb   :  { %59 = dma.hbm_to_vmem [thread:$0]  %s52_s24, 4096, %s54_s26, [#allocation5], %s509_s21, %s509_s21, %s510_s22  }
   0xc   :  { %s66_s30 = sshll.u32 %s512_s29, 4  ;;  %s67_s30 = int_to_ptr.vmem [resolvable:$true] %s66_s30 }
   0xd   :  { %72 = dma.hbm_to_vmem [thread:$0]  %s65_s28, 2048, %s67_s30, [#allocation8], %s506_s17, %s506_s17, %s507_s18  }
   0xe   :  { %499 = dma.done.wait [#allocation3], 4096  }
   0xf   :  { %500 = vsyncadd [#allocation3], 4294963200 }
  0x10   :  { %501 = dma.done.wait [#allocation5], 6144  }
  0x11   :  { %502 = vsyncadd [#allocation5], 4294961152 }
  0x12   :  { %503 = dma.done.wait [#allocation8], 2048  }
  0x13   :  { %504 = vsyncadd [#allocation8], 4294965248  ;;  %v127_v0 = vld [vmem:[#allocation2 + $0xf0] sm:$0xff]  ;;  %v128_v1 = vld [vmem:[#allocation2 + $0xf8] sm:$0xff] }
  0x14   :  { %v125_v2 = vld [vmem:[#allocation2 + $0xe0] sm:$0xff]  ;;  %201 = vmatpush.msra.mxu2 %v127_v0  ;;  %221 = vmatpush.msra.mxu3 %v128_v1  ;;  %v126_v3 = vld [vmem:[#allocation2 + $0xe8] sm:$0xff]  ;;  %v123_v4 = vld [vmem:[#allocation2 + $0xd0] sm:$0xff] }
  0x15   :  { %v124_v5 = vld [vmem:[#allocation2 + $0xd8] sm:$0xff]  ;;  %v159_v7 = vld [vmem:[#allocation6 + $0xf0] sm:$0xff]  ;;  %v158_v8 = vld [vmem:[#allocation6 + $0xe8] sm:$0xff] }
  0x16   :  { %v160_v6 = vld [vmem:[#allocation6 + $0xf8] sm:$0xff]  ;;  %202 = vmatpush.msra.mxu2 %v125_v2  ;;  %222 = vmatpush.msra.mxu3 %v126_v3  ;;  %v157_v9 = vld [vmem:[#allocation6 + $0xe0] sm:$0xff]  ;;  %v122_v11 = vld [vmem:[#allocation2 + $0xc8] sm:$0xff] }
  0x17   :  { %181 = vmatpush.msra.mxu1 %v160_v6  ;;  %161 = vmatpush.msra.mxu0 %v159_v7  ;;  %v121_v10 = vld [vmem:[#allocation2 + $0xc0] sm:$0xff]  ;;  %v156_v12 = vld [vmem:[#allocation6 + $0xd8] sm:$0xff]  ;;  %v155_v13 = vld [vmem:[#allocation6 + $0xd0] sm:$0xff] }
  0x18   :  { %203 = vmatpush.msra.mxu2 %v123_v4  ;;  %223 = vmatpush.msra.mxu3 %v124_v5  ;;  %v119_v14 = vld [vmem:[#allocation2 + $0xb0] sm:$0xff]  ;;  %v120_v15 = vld [vmem:[#allocation2 + $0xb8] sm:$0xff]  ;;  %v154_v16 = vld [vmem:[#allocation6 + $0xc8] sm:$0xff] }
  0x19   :  { %182 = vmatpush.msra.mxu1 %v158_v8  ;;  %162 = vmatpush.msra.mxu0 %v157_v9  ;;  %v153_v17 = vld [vmem:[#allocation6 + $0xc0] sm:$0xff]  ;;  %v118_v19 = vld [vmem:[#allocation2 + $0xa8] sm:$0xff]  ;;  %v152_v20 = vld [vmem:[#allocation6 + $0xb8] sm:$0xff] }
  0x1a   :  { %204 = vmatpush.msra.mxu2 %v121_v10  ;;  %224 = vmatpush.msra.mxu3 %v122_v11  ;;  %v117_v18 = vld [vmem:[#allocation2 + $0xa0] sm:$0xff]  ;;  %v151_v21 = vld [vmem:[#allocation6 + $0xb0] sm:$0xff]  ;;  %v116_v23 = vld [vmem:[#allocation2 + $0x98] sm:$0xff] }
  0x1b   :  { %183 = vmatpush.msra.mxu1 %v156_v12  ;;  %163 = vmatpush.msra.mxu0 %v155_v13  ;;  %v115_v22 = vld [vmem:[#allocation2 + $0x90] sm:$0xff]  ;;  %v150_v24 = vld [vmem:[#allocation6 + $0xa8] sm:$0xff]  ;;  %v149_v25 = vld [vmem:[#allocation6 + $0xa0] sm:$0xff] }
  0x1c   :  { %205 = vmatpush.msra.mxu2 %v119_v14  ;;  %225 = vmatpush.msra.mxu3 %v120_v15  ;;  %v113_v26 = vld [vmem:[#allocation2 + $0x80] sm:$0xff]  ;;  %v114_v27 = vld [vmem:[#allocation2 + $0x88] sm:$0xff]  ;;  %v148_v28 = vld [vmem:[#allocation6 + $0x98] sm:$0xff] }
  0x1d   :  { %184 = vmatpush.msra.mxu1 %v154_v16  ;;  %164 = vmatpush.msra.mxu0 %v153_v17  ;;  %v147_v29 = vld [vmem:[#allocation6 + $0x90] sm:$0xff]  ;;  %v112_v31 = vld [vmem:[#allocation2 + $0x78] sm:$0xff]  ;;  %v146_v32 = vld [vmem:[#allocation6 + $0x88] sm:$0xff] }
  0x1e   :  { %206 = vmatpush.msra.mxu2 %v117_v18  ;;  %226 = vmatpush.msra.mxu3 %v118_v19  ;;  %v111_v30 = vld [vmem:[#allocation2 + $0x70] sm:$0xff]  ;;  %v145_v33 = vld [vmem:[#allocation6 + $0x80] sm:$0xff]  ;;  %v110_v35 = vld [vmem:[#allocation2 + $0x68] sm:$0xff] }
  0x1f   :  { %185 = vmatpush.msra.mxu1 %v152_v20  ;;  %165 = vmatpush.msra.mxu0 %v151_v21  ;;  %v109_v34 = vld [vmem:[#allocation2 + $0x60] sm:$0xff]  ;;  %v144_v36 = vld [vmem:[#allocation6 + $0x78] sm:$0xff]  ;;  %v143_v37 = vld [vmem:[#allocation6 + $0x70] sm:$0xff] }
  0x20   :  { %207 = vmatpush.msra.mxu2 %v115_v22  ;;  %227 = vmatpush.msra.mxu3 %v116_v23  ;;  %v107_v38 = vld [vmem:[#allocation2 + $0x50] sm:$0xff]  ;;  %v108_v39 = vld [vmem:[#allocation2 + $0x58] sm:$0xff]  ;;  %v142_v40 = vld [vmem:[#allocation6 + $0x68] sm:$0xff] }
  0x21   :  { %186 = vmatpush.msra.mxu1 %v150_v24  ;;  %166 = vmatpush.msra.mxu0 %v149_v25  ;;  %v141_v41 = vld [vmem:[#allocation6 + $0x60] sm:$0xff]  ;;  %v106_v43 = vld [vmem:[#allocation2 + $0x48] sm:$0xff]  ;;  %v140_v44 = vld [vmem:[#allocation6 + $0x58] sm:$0xff] }
  0x22   :  { %208 = vmatpush.msra.mxu2 %v113_v26  ;;  %228 = vmatpush.msra.mxu3 %v114_v27  ;;  %v105_v42 = vld [vmem:[#allocation2 + $0x40] sm:$0xff]  ;;  %v139_v45 = vld [vmem:[#allocation6 + $0x50] sm:$0xff]  ;;  %v104_v47 = vld [vmem:[#allocation2 + $0x38] sm:$0xff] }
  0x23   :  { %187 = vmatpush.msra.mxu1 %v148_v28  ;;  %167 = vmatpush.msra.mxu0 %v147_v29  ;;  %v103_v46 = vld [vmem:[#allocation2 + $0x30] sm:$0xff]  ;;  %v138_v48 = vld [vmem:[#allocation6 + $0x48] sm:$0xff]  ;;  %v137_v49 = vld [vmem:[#allocation6 + $0x40] sm:$0xff] }
  0x24   :  { %209 = vmatpush.msra.mxu2 %v111_v30  ;;  %229 = vmatpush.msra.mxu3 %v112_v31  ;;  %v101_v50 = vld [vmem:[#allocation2 + $0x20] sm:$0xff]  ;;  %v102_v51 = vld [vmem:[#allocation2 + $0x28] sm:$0xff]  ;;  %v136_v52 = vld [vmem:[#allocation6 + $0x38] sm:$0xff] }
  0x25   :  { %188 = vmatpush.msra.mxu1 %v146_v32  ;;  %168 = vmatpush.msra.mxu0 %v145_v33  ;;  %v135_v53 = vld [vmem:[#allocation6 + $0x30] sm:$0xff]  ;;  %v100_v55 = vld [vmem:[#allocation2 + $0x18] sm:$0xff]  ;;  %v134_v56 = vld [vmem:[#allocation6 + $0x28] sm:$0xff] }
  0x26   :  { %210 = vmatpush.msra.mxu2 %v109_v34  ;;  %230 = vmatpush.msra.mxu3 %v110_v35  ;;  %v99_v54 = vld [vmem:[#allocation2 + $0x10] sm:$0xff]  ;;  %v133_v57 = vld [vmem:[#allocation6 + $0x20] sm:$0xff]  ;;  %v98_v59 = vld [vmem:[#allocation2 + $0x8] sm:$0xff] }
  0x27   :  { %189 = vmatpush.msra.mxu1 %v144_v36  ;;  %169 = vmatpush.msra.mxu0 %v143_v37  ;;  %v97_v58 = vld [vmem:[#allocation2] sm:$0xff]  ;;  %v132_v61 = vld [vmem:[#allocation6 + $0x18] sm:$0xff]  ;;  %v131_v62 = vld [vmem:[#allocation6 + $0x10] sm:$0xff] }
  0x28   :  { %211 = vmatpush.msra.mxu2 %v107_v38  ;;  %231 = vmatpush.msra.mxu3 %v108_v39  ;;  %v578_v60 = vld [vmem:[%s605_s0] sm:$0xff]  ;;  %v130_v63 = vld [vmem:[#allocation6 + $0x8] sm:$0xff]  ;;  %v342_v1 = vld [vmem:[#allocation7 + $0x78] sm:$0xff] }
  0x29   :  { %190 = vmatpush.msra.mxu1 %v142_v40  ;;  %170 = vmatpush.msra.mxu0 %v141_v41  ;;  %v129_v0 = vld [vmem:[#allocation6] sm:$0xff]  ;;  %v302_v3 = vld [vmem:[#allocation4 + $0x78] sm:$0xff]  ;;  %v341_v4 = vld [vmem:[#allocation7 + $0x70] sm:$0xff] }
  0x2a   :  { %212 = vmatpush.msra.mxu2 %v105_v42  ;;  %232 = vmatpush.msra.mxu3 %v106_v43  ;;  %v585_v2 = vld [vmem:[%s606_s1] sm:$0xff]  ;;  %v301_v5 = vld [vmem:[#allocation4 + $0x70] sm:$0xff]  ;;  %v340_v6 = vld [vmem:[#allocation7 + $0x68] sm:$0xff] }
  0x2b   :  { %191 = vmatpush.msra.mxu1 %v140_v44  ;;  %171 = vmatpush.msra.mxu0 %v139_v45  ;;  %v300_v7 = vld [vmem:[#allocation4 + $0x68] sm:$0xff]  ;;  %v339_v8 = vld [vmem:[#allocation7 + $0x60] sm:$0xff]  ;;  %v338_v10 = vld [vmem:[#allocation7 + $0x58] sm:$0xff] }
  0x2c   :  { %213 = vmatpush.msra.mxu2 %v103_v46  ;;  %233 = vmatpush.msra.mxu3 %v104_v47  ;;  %v299_v9 = vld [vmem:[#allocation4 + $0x60] sm:$0xff]  ;;  %v298_v11 = vld [vmem:[#allocation4 + $0x58] sm:$0xff]  ;;  %v337_v12 = vld [vmem:[#allocation7 + $0x50] sm:$0xff] }
  0x2d   :  { %192 = vmatpush.msra.mxu1 %v138_v48  ;;  %172 = vmatpush.msra.mxu0 %v137_v49  ;;  %v297_v13 = vld [vmem:[#allocation4 + $0x50] sm:$0xff]  ;;  %v336_v14 = vld [vmem:[#allocation7 + $0x48] sm:$0xff]  ;;  %v335_v16 = vld [vmem:[#allocation7 + $0x40] sm:$0xff] }
  0x2e   :  { %214 = vmatpush.msra.mxu2 %v101_v50  ;;  %234 = vmatpush.msra.mxu3 %v102_v51  ;;  %v296_v15 = vld [vmem:[#allocation4 + $0x48] sm:$0xff]  ;;  %v295_v17 = vld [vmem:[#allocation4 + $0x40] sm:$0xff]  ;;  %v334_v18 = vld [vmem:[#allocation7 + $0x38] sm:$0xff] }
  0x2f   :  { %193 = vmatpush.msra.mxu1 %v136_v52  ;;  %173 = vmatpush.msra.mxu0 %v135_v53  ;;  %v294_v19 = vld [vmem:[#allocation4 + $0x38] sm:$0xff]  ;;  %v333_v20 = vld [vmem:[#allocation7 + $0x30] sm:$0xff]  ;;  %v332_v22 = vld [vmem:[#allocation7 + $0x28] sm:$0xff] }
  0x30   :  { %215 = vmatpush.msra.mxu2 %v99_v54  ;;  %235 = vmatpush.msra.mxu3 %v100_v55  ;;  %v293_v21 = vld [vmem:[#allocation4 + $0x30] sm:$0xff]  ;;  %v292_v23 = vld [vmem:[#allocation4 + $0x28] sm:$0xff]  ;;  %v331_v24 = vld [vmem:[#allocation7 + $0x20] sm:$0xff] }
  0x31   :  { %194 = vmatpush.msra.mxu1 %v134_v56  ;;  %174 = vmatpush.msra.mxu0 %v133_v57  ;;  %v291_v25 = vld [vmem:[#allocation4 + $0x20] sm:$0xff]  ;;  %v330_v26 = vld [vmem:[#allocation7 + $0x18] sm:$0xff]  ;;  %v329_v28 = vld [vmem:[#allocation7 + $0x10] sm:$0xff] }
  0x32   :  { %216 = vmatpush.msra.mxu2 %v97_v58  ;;  %236 = vmatpush.msra.mxu3 %v98_v59  ;;  %v290_v27 = vld [vmem:[#allocation4 + $0x18] sm:$0xff]  ;;  %v289_v29 = vld [vmem:[#allocation4 + $0x10] sm:$0xff]  ;;  %v328_v30 = vld [vmem:[#allocation7 + $0x8] sm:$0xff] }
  0x33   :  { %217 = vmatmul.f32.vlgmr.msra.gmra.mxu2 %v578_v60  ;;  %237 = vmatmul.f32.vlgmr.msra.gmra.mxu3 %v578_v60  ;;  %v288_v31 = vld [vmem:[#allocation4 + $0x8] sm:$0xff]  ;;  %v327_v32 = vld [vmem:[#allocation7] sm:$0xff] }
  0x34   :  { %195 = vmatpush.msra.mxu1 %v132_v61  ;;  %175 = vmatpush.msra.mxu0 %v131_v62  ;;  %v287_v33 = vld [vmem:[#allocation4] sm:$0xff] }
  0x35   :  { %v241_v34 = vld [vmem:[%s611_s6] sm:$0x3] }
  0x36   :  { %196 = vmatpush.msra.mxu1 %v130_v63  ;;  %176 = vmatpush.msra.mxu0 %v129_v0  ;;  %v243_v37 = vperm.slane %v241_v34, 0  ;;  %v244_v38 = vperm.slane %v241_v34, 1  ;;  %v391_v55 = vld [vmem:[%s613_s8] ss:$0 sm:$0xff] }
  0x37   :  { %177 = vmatmul.f32.vlgmr.msra.gmra.mxu0 %v585_v2  ;;  %197 = vmatmul.f32.vlgmr.msra.gmra.mxu1 %v585_v2 }
  0x38   :  { %347 = vmatpush.msrb.mxu1 %v342_v1  ;;  %307 = vmatpush.msrb.mxu0 %v302_v3 }
  0x3a   :  { %348 = vmatpush.msrb.mxu1 %v341_v4  ;;  %308 = vmatpush.msrb.mxu0 %v301_v5 }
  0x3c   :  { %349 = vmatpush.msrb.mxu1 %v340_v6  ;;  %309 = vmatpush.msrb.mxu0 %v300_v7 }
  0x3e   :  { %350 = vmatpush.msrb.mxu1 %v339_v8  ;;  %310 = vmatpush.msrb.mxu0 %v299_v9 }
  0x40   :  { %351 = vmatpush.msrb.mxu1 %v338_v10  ;;  %311 = vmatpush.msrb.mxu0 %v298_v11 }
  0x42   :  { %352 = vmatpush.msrb.mxu1 %v337_v12  ;;  %312 = vmatpush.msrb.mxu0 %v297_v13 }
  0x44   :  { %353 = vmatpush.msrb.mxu1 %v336_v14  ;;  %313 = vmatpush.msrb.mxu0 %v296_v15 }
  0x46   :  { %354 = vmatpush.msrb.mxu1 %v335_v16  ;;  %314 = vmatpush.msrb.mxu0 %v295_v17 }
  0x48   :  { %355 = vmatpush.msrb.mxu1 %v334_v18  ;;  %315 = vmatpush.msrb.mxu0 %v294_v19 }
  0x4a   :  { %356 = vmatpush.msrb.mxu1 %v333_v20  ;;  %316 = vmatpush.msrb.mxu0 %v293_v21 }
  0x4c   :  { %357 = vmatpush.msrb.mxu1 %v332_v22  ;;  %317 = vmatpush.msrb.mxu0 %v292_v23 }
  0x4e   :  { %358 = vmatpush.msrb.mxu1 %v331_v24  ;;  %318 = vmatpush.msrb.mxu0 %v291_v25 }
  0x50   :  { %359 = vmatpush.msrb.mxu1 %v330_v26  ;;  %319 = vmatpush.msrb.mxu0 %v290_v27 }
  0x52   :  { %360 = vmatpush.msrb.mxu1 %v329_v28  ;;  %320 = vmatpush.msrb.mxu0 %v289_v29 }
  0x54   :  { %361 = vmatpush.msrb.mxu1 %v328_v30  ;;  %321 = vmatpush.msrb.mxu0 %v288_v31 }
  0x56   :  { %362 = vmatpush.msrb.mxu1 %v327_v32  ;;  %322 = vmatpush.msrb.mxu0 %v287_v33 }
  0x57   :  { %363 = vmatmul.f32.vlgmr.msrb.gmra.mxu1 %v585_v2  ;;  %323 = vmatmul.f32.vlgmr.msrb.gmra.mxu0 %v578_v60  ;;  %v392_v60 = vld [vmem:[%s612_s7] ss:$0 sm:$0xff] }
  0xb4   :  { %v178_v35 = vpop.f32.mrf.mxu0  ;;  %v198_v36 = vpop.f32.mrf.mxu1 }
  0xb6   :  { %v218_v39 = vpop.f32.mrf.mxu2  ;;  %v238_v40 = vpop.f32.mrf.mxu3 }
  0xb7   :  { %v219_v41 = vadd.f32 %v218_v39, %v178_v35  ;;  %v239_v42 = vadd.f32 %v238_v40, %v198_v36 }
  0xb9   :  { %v247_v43 = vadd.f32 %v243_v37, %v219_v41  ;;  %v248_v44 = vadd.f32 %v244_v38, %v239_v42 }
  0xbb   :  { %v381_v45 = vmul.f32 -1.442695, %v247_v43  ;;  %v382_v46 = vmul.f32 -1.442695, %v248_v44 }
  0xbd   :  { %393 = vpow2.f32 %v381_v45 }
  0xbe   :  { %395 = vpow2.f32 %v382_v46 }
  0xc3   :  { %v394_v47 = vpop.eup %393 }
  0xc4   :  { %v396_v48 = vpop.eup %395  ;;  %v255_v49 = vadd.f32 1.0, %v394_v47 }
  0xc5   :  { %v256_v50 = vadd.f32 1.0, %v396_v48 }
  0xc6   :  { %vm262_vm4 = vweird.f32 %v255_v49  ;;  %v268_v10 = vand.u32 2147483648, %v255_v49  ;;  %v266_v12 = vand.u32 2147483647, %v255_v49 }
  0xc7   :  { %397 = vrcp.f32 %v256_v50  ;;  %v283_v57 = vand.u32 2147483648, %v256_v50  ;;  %v281_v59 = vand.u32 2147483647, %v256_v50  ;;  %vm277_vm1 = vweird.f32 %v256_v50 }
  0xc8   :  { %399 = vrcp.f32 %v255_v49  ;;  %v269_v13 = vor.u32 1.1754944e-38, %v268_v10  ;;  %vm267_vm7 = vcmp.eq.f32.partialorder %v266_v12, 8.507059e+37 }
  0xc9   :  { %v284_v3 = vor.u32 1.1754944e-38, %v283_v57  ;;  %vm282_vm3 = vcmp.eq.f32.partialorder %v281_v59, 8.507059e+37 }
  0xcd   :  { %v398_v51 = vpop.eup %397 }
  0xce   :  { %v400_v52 = vpop.eup %399  ;;  %v273_v53 = vmul.f32 %v398_v51, %v256_v50  ;;  %vm278_vm0 = vweird.f32 %v398_v51 }
  0xcf   :  { %v258_v56 = vmul.f32 %v400_v52, %v255_v49  ;;  %vm279_vm2 = vmor %vm277_vm1, %vm278_vm0  ;;  %vm263_vm5 = vweird.f32 %v400_v52 }
  0xd0   :  { %v274_v54 = vsub.f32 1.0, %v273_v53  ;;  %vm264_vm6 = vmor %vm262_vm4, %vm263_vm5 }
  0xd1   :  { %v259_v1 = vsub.f32 1.0, %v258_v56 }
  0xd2   :  { %v275_v58 = vmul.f32 %v398_v51, %v274_v54 }
  0xd3   :  { %v260_v8 = vmul.f32 %v400_v52, %v259_v1 }
  0xd4   :  { %v364_v61 = vpop.f32.mrf.mxu1  ;;  %v276_v62 = vadd.f32 %v398_v51, %v275_v58  ;;  %v324_v0 = vpop.f32.mrf.mxu0 }
  0xd5   :  { %v365_v63 = vadd.f32 %v391_v55, %v364_v61  ;;  %v325_v5 = vadd.f32 %v392_v60, %v324_v0  ;;  %v261_v11 = vadd.f32 %v400_v52, %v260_v8 }
  0xd6   :  { %v280_v4 = vsel %vm279_vm2, %v398_v51, %v276_v62 }
  0xd7   :  { %v285_v6 = vsel %vm282_vm3, %v284_v3, %v280_v4  ;;  %v265_v14 = vsel %vm264_vm6, %v400_v52, %v261_v11 }
  0xd8   :  { %v367_v7 = vmul.f32 %v365_v63, %v285_v6  ;;  %v270_v17 = vsel %vm267_vm7, %v269_v13, %v265_v14 }
  0xda   :  { %v368_v9 = vadd.f32 %v367_v7, %v325_v5 }
  0xdc   :  { %401 = vtanh.f32 %v368_v9 }
  0xe2   :  { %v402_v15 = vpop.eup %401 }
  0xe3   :  { %v370_v16 = vsub.f32 %v402_v15, %v585_v2 }
  0xe5   :  { %v371_v18 = vmul.f32 %v370_v16, %v270_v17 }
  0xe7   :  { %v372_v19 = vadd.f32 %v371_v18, %v585_v2 }
  0xe9   :  { %373 = vst [vmem:[%s614_s9] sm:$0xff] %v372_v19 }
  0xea   :  { %378 = vsyncpa [#allocation3], 1 }
  0xeb   :  { %379 = vsyncpa [#allocation5], 1 }
  0xec   :  { %380 = vsyncpa [#allocation8], 1 }

</bundles_post_ra>
